<compile_context>
chip_gen: v7x
topology: tpu7x:2x2x1
jax: 0.10.0
libtpu: 0.0.40
codegen_flags: <defaults>
</compile_context>

<pallas_src>
import functools

import jax
import jax.numpy as jnp
from jax import lax
from jax.experimental import pallas as pl
from jax.experimental.pallas import tpu as pltpu


def _round_up(x, m):
    return (x + m - 1) // m * m


def _pick_row_tile(H, W, p, row_tile, target_lanes=8192):
    """Row-tile height TH: divides H, TH*W lane-aligned (128), halo window
    (TH+2p)*W under the lane budget.  Falls back to the full image."""
    if row_tile is not None:
        if H % row_tile != 0:
            raise ValueError("row_tile must divide H")
        if row_tile != H and (row_tile * W) % 128 != 0:
            raise ValueError("row_tile*W must be a multiple of 128 (or row_tile == H)")
        return row_tile
    for th in range(H, 0, -1):
        if H % th == 0 and (th * W) % 128 == 0 and (th + 2 * p) * W <= target_lanes:
            return th
    return H


def _pick_vmem_limit():
    """Per-generation scoped-VMEM budget (v7x has only 64 MiB physical)."""
    try:
        kind = jax.devices()[0].device_kind.lower()
    except Exception:
        return None
    if "v7" in kind:
        return 48 * 1024 * 1024
    if "v6" in kind or "v5 lite" in kind or "v5e" in kind:
        return 96 * 1024 * 1024
    return None


def _residual_block_kernel(x_ref, w1p_ref, b1p_ref, w2_ref, b2_ref,
                           colmask_ref, rowmask_ref, w3_ref, b3_ref, o_ref, *,
                           W, K, TH, Cmid, Swin, has_proj, conv2_concat,
                           compute_dtype):
    """One (batch, row-tile) grid step.  Channels on sublanes, flattened
    window (halo rows included, lane-padded) on the lane axis.

      x_ref:       (Cin, Swin)          input window, Swin = rnd128((TH+2p)*W)
      w1p_ref:     (Cmid[+Cout], Cin)   conv1 weight (+ optional 1x1 proj)
      b1p_ref:     (Cmid[+Cout], 1)
      w2_ref:      (Cmid, K*K*Cmid)     [concat path]  or  (K*K, Cmid, Cmid)
      b2_ref:      (Cmid, 1)
      colmask_ref: (K, Swin)            left/right border validity per column tap
      rowmask_ref: (1, Swin)            1.0 on real image rows of this window
      w3_ref:      (Cout, Cmid)
      b3_ref:      (Cout, 1)
      o_ref:       (Cout, TH*W)         interior rows only (halo discarded)
    """
    p = (K - 1) // 2
    cdt = compute_dtype

    x = x_ref[...]                                               # (Cin, Swin) f32

    # conv1 (1x1) fused with the optional 1x1 identity projection: one MXU pass
    # with the big window axis on the output/lane side.
    y = jnp.dot(w1p_ref[...].astype(cdt), x.astype(cdt),
                preferred_element_type=jnp.float32) + b1p_ref[...]
    ident = y[Cmid:, :] if has_proj else x                       # f32 residual branch

    # conv2 must see 0 (not the conv1 bias) on the "same"-padding rows;
    # rowmask zeroes exactly those window rows.  Cast once so the K*K rolls /
    # masks / matmul operands move compute_dtype-sized data.
    y1 = (y[:Cmid, :] * rowmask_ref[...]).astype(cdt)            # (Cmid, Swin)
    colmask = colmask_ref[...].astype(cdt)                       # (K, Swin)

    # conv2 (KxK, stride 1, symmetric zero padding): window shifts are XLU lane
    # rotations; only left/right image borders need masking (top/bottom are the
    # halo rows), and the centre-column taps need no mask at all.
    def tap(dy, dx):
        off = (dy - p) * W + (dx - p)
        v = y1 if off == 0 else pltpu.roll(y1, (-off) % Swin, axis=1)
        if dx != p:
            v = v * colmask[dx:dx + 1, :]
        return v

    if conv2_concat:
        # Small Cmid: one matmul with contraction K*K*Cmid keeps the MXU fed.
        patch = jnp.concatenate([tap(dy, dx) for dy in range(K)
                                 for dx in range(K)], axis=0)    # (K*K*Cmid, Swin)
        y2 = jnp.dot(w2_ref[...].astype(cdt), patch,
                     preferred_element_type=jnp.float32)
    else:
        # Large Cmid: per-tap accumulation -> no (K*K*Cmid, Swin) slab is live.
        y2 = None
        for dy in range(K):
            for dx in range(K):
                c = jnp.dot(w2_ref[dy * K + dx].astype(cdt), tap(dy, dx),
                            preferred_element_type=jnp.float32)
                y2 = c if y2 is None else y2 + c
    y2 = jnp.maximum(y2 + b2_ref[...], 0.0)          # act1 identity, act2 relu

    # conv3 (1x1) + residual + act4 relu on the interior (non-halo) rows only.
    lo, hi = p * W, (p + TH) * W
    y3 = jnp.dot(w3_ref[...].astype(cdt), y2[:, lo:hi].astype(cdt),
                 preferred_element_type=jnp.float32) + b3_ref[...]
    o_ref[...] = jnp.maximum(ident[:, lo:hi] + y3, 0.0).astype(o_ref.dtype)


def residual_feature_block(x, params, kernel_size, *,
                           compute_dtype=jnp.bfloat16, row_tile=None,
                           conv2_mode="auto", interpret=False):
    """x: (N, Cin, H, W) float32 (PyTorch NCHW).  Returns (N, Cout, H, W)."""
    N, Cin, H, W = x.shape
    K = kernel_size
    if K % 2 != 1:
        raise ValueError("kernel_size must be odd for symmetric padding")
    p = (K - 1) // 2
    Cmid = params["w1"].shape[0]
    Cout = params["w3"].shape[0]
    has_proj = "wp" in params
    if not has_proj:
        assert Cin == Cout, "identity passthrough needs in_channels == out_channels"

    TH = _pick_row_tile(H, W, p, row_tile)
    nH = H // TH
    S = H * W
    KW = TH * W
    Swin_raw = (TH + 2 * p) * W
    Swin = _round_up(Swin_raw, 128)      # lane-pad so rolls/stores stay aligned
    KK = K * K

    # ---- overlapping row windows of x (p halo rows, zero "same" padding) ----
    x_pad = jnp.pad(x, ((0, 0), (0, 0), (p, p), (0, 0)))
    rows = jnp.arange(nH)[:, None] * TH + jnp.arange(TH + 2 * p)[None, :]
    x_win = jnp.moveaxis(x_pad[:, :, rows, :], 2, 1)      # (N, nH, Cin, TH+2p, W)
    x_win = x_win.reshape(N, nH, Cin, Swin_raw)
    if Swin != Swin_raw:
        x_win = jnp.pad(x_win, ((0, 0), (0, 0), (0, 0), (0, Swin - Swin_raw)))

    # ---- weights in matmul (out, in) orientation; MXU operands pre-cast ----
    w1m = params["w1"].reshape(Cmid, Cin)
    if has_proj:
        w1p = jnp.concatenate([w1m, params["wp"].reshape(Cout, Cin)], axis=0)
        b1p = jnp.concatenate([params["b1"], params["bp"]], axis=0)[:, None]
    else:
        w1p, b1p = w1m, params["b1"][:, None]
    C1 = w1p.shape[0]

    conv2_concat = (conv2_mode == "concat" or
                    (conv2_mode == "auto" and KK * Cmid <= 256))
    if conv2_concat:     # (Cmid, K*K*Cmid), tap-major / channel-minor
        w2 = jnp.transpose(params["w2"], (0, 2, 3, 1)).reshape(Cmid, KK * Cmid)
    else:                # (K*K, Cmid_out, Cmid_in)
        w2 = jnp.transpose(params["w2"], (2, 3, 0, 1)).reshape(KK, Cmid, Cmid)
    w3 = params["w3"].reshape(Cout, Cmid)
    w1p, w2, w3 = (w.astype(compute_dtype) for w in (w1p, w2, w3))
    b2 = params["b2"][:, None]
    b3 = params["b3"][:, None]

    # ---- tiny border masks (no channel expansion) ----
    col = jnp.arange(Swin, dtype=jnp.int32) % W
    colmask = jnp.stack(
        [(col + (dx - p) >= 0) & (col + (dx - p) < W) for dx in range(K)]
    ).astype(jnp.float32)                                    # (K, Swin)
    win_row = jnp.arange(Swin, dtype=jnp.int32) // W
    hp = jnp.arange(nH, dtype=jnp.int32)[:, None] * TH + win_row[None, :]
    rowmask = ((hp >= p) & (hp < H + p) &
               (jnp.arange(Swin) < Swin_raw)[None, :]).astype(jnp.float32)
    rowmask = rowmask[:, None, :]                            # (nH, 1, Swin)

    wbytes = jnp.dtype(compute_dtype).itemsize
    flops = 2 * N * S * (Cin * C1 + KK * Cmid * Cmid + Cmid * Cout) + 4 * N * S * Cout
    bytes_accessed = (4 * (x_win.size + N * Cout * S + colmask.size + rowmask.size
                           + C1 + Cmid + Cout)
                      + wbytes * (w1p.size + w2.size + w3.size))

    kernel = functools.partial(
        _residual_block_kernel, W=W, K=K, TH=TH, Cmid=Cmid, Swin=Swin,
        has_proj=has_proj, conv2_concat=conv2_concat, compute_dtype=compute_dtype)

    cm = lambda n, t: (0, 0)                        # constant 2-D blocks
    w2_spec = (pl.BlockSpec((Cmid, KK * Cmid), cm) if conv2_concat
               else pl.BlockSpec((KK, Cmid, Cmid), lambda n, t: (0, 0, 0)))

    out_flat = pl.pallas_call(
        kernel,
        out_shape=jax.ShapeDtypeStruct((N, Cout, S), x.dtype),
        grid=(N, nH),
        in_specs=[
            pl.BlockSpec((None, None, Cin, Swin), lambda n, t: (n, t, 0, 0)),  # x window
            pl.BlockSpec((C1, Cin), cm),                                       # w1 (+proj)
            pl.BlockSpec((C1, 1), cm),                                         # b1 (+proj)
            w2_spec,                                                           # w2
            pl.BlockSpec((Cmid, 1), cm),                                       # b2
            pl.BlockSpec((K, Swin), cm),                                       # column mask
            pl.BlockSpec((None, 1, Swin), lambda n, t: (t, 0, 0)),             # row mask
            pl.BlockSpec((Cout, Cmid), cm),                                    # w3
            pl.BlockSpec((Cout, 1), cm),                                       # b3
        ],
        out_specs=pl.BlockSpec((None, Cout, KW), lambda n, t: (n, 0, t)),
        compiler_params=pltpu.CompilerParams(
            dimension_semantics=("parallel", "parallel"),
            vmem_limit_bytes=_pick_vmem_limit()),
        cost_estimate=pl.CostEstimate(flops=int(flops), transcendentals=0,
                                      bytes_accessed=int(bytes_accessed)),
        interpret=interpret,
    )(x_win, w1p, b1p, w2, b2, colmask, rowmask, w3, b3)
    return out_flat.reshape(N, Cout, H, W)


# ----------------------- plain-JAX reference (for checking) -----------------
def _conv2d_nchw(x, w, b, padding):
    y = lax.conv_general_dilated(
        x, w, window_strides=(1, 1),
        padding=[(padding, padding), (padding, padding)],
        dimension_numbers=("NCHW", "OIHW", "NCHW"))
    return y + b.reshape(1, -1, 1, 1)


def residual_feature_block_ref(x, params, kernel_size):
    p = (kernel_size - 1) // 2
    y = _conv2d_nchw(x, params["w1"], params["b1"], 0)
    y = _conv2d_nchw(y, params["w2"], params["b2"], p)
    y = jnp.maximum(y, 0.0)                         # act1 identity, act2 relu
    y = _conv2d_nchw(y, params["w3"], params["b3"], 0)
    ident = _conv2d_nchw(x, params["wp"], params["bp"], 0) if "wp" in params else x
    return jnp.maximum(ident + y, 0.0)              # act3 identity, +res, act4 relu


def make_params(key, in_channels, mid_channels, out_channels, kernel_size):
    """Weights in PyTorch Conv2d (OIHW) layout, biases as (C,)."""
    ks = jax.random.split(key, 8)
    s = 0.1
    params = {
        "w1": s * jax.random.normal(ks[0], (mid_channels, in_channels, 1, 1), jnp.float32),
        "b1": s * jax.random.normal(ks[1], (mid_channels,), jnp.float32),
        "w2": s * jax.random.normal(ks[2], (mid_channels, mid_channels,
                                            kernel_size, kernel_size), jnp.float32),
        "b2": s * jax.random.normal(ks[3], (mid_channels,), jnp.float32),
        "w3": s * jax.random.normal(ks[4], (out_channels, mid_channels, 1, 1), jnp.float32),
        "b3": s * jax.random.normal(ks[5], (out_channels,), jnp.float32),
    }
    if in_channels != out_channels:   # proj_conv only exists in this case (as in torch)
        params["wp"] = s * jax.random.normal(ks[6], (out_channels, in_channels, 1, 1), jnp.float32)
        params["bp"] = s * jax.random.normal(ks[7], (out_channels,), jnp.float32)
    return params


if __name__ == "__main__":
    N, H, W = 2, 16, 16
    in_channels, mid_channels, out_channels = 4, 8, 8
    kernel_size = 3

    key = jax.random.PRNGKey(0)
    kx, kp, kx2, kp2 = jax.random.split(key, 4)
    x = jax.random.normal(kx, (N, in_channels, H, W), jnp.float32)
    params = make_params(kp, in_channels, mid_channels, out_channels, kernel_size)
    ref = residual_feature_block_ref(x, params, kernel_size)

    # f32 MXU operands, untiled spatial axis -> tight check vs reference.
    out = jax.block_until_ready(
        residual_feature_block(x, params, kernel_size, compute_dtype=jnp.float32))
    assert out.shape == (N, out_channels, H, W)
    assert jnp.allclose(out, ref, atol=1e-4, rtol=1e-4), "f32 mismatch vs reference"

    # f32, row-tiled spatial axis (grid (N, 2)) -> exercises the halo path.
    out_t = jax.block_until_ready(
        residual_feature_block(x, params, kernel_size,
                               compute_dtype=jnp.float32, row_tile=8))
    assert jnp.allclose(out_t, ref, atol=1e-4, rtol=1e-4), "tiled mismatch vs reference"

    # f32, per-tap conv2 accumulation (large-Cmid path), tiled.
    out_pt = jax.block_until_ready(
        residual_feature_block(x, params, kernel_size, compute_dtype=jnp.float32,
                               row_tile=8, conv2_mode="pertap"))
    assert jnp.allclose(out_pt, ref, atol=1e-4, rtol=1e-4), "per-tap mismatch vs reference"

    # default bf16 MXU operands (f32 accumulation / elementwise) -> loose check.
    out_bf = jax.block_until_ready(residual_feature_block(x, params, kernel_size))
    assert jnp.allclose(out_bf, ref, atol=5e-2, rtol=5e-2), "bf16 mismatch vs reference"

    # in_channels == out_channels -> no projection conv, identity passthrough.
    x2 = jax.random.normal(kx2, (N, out_channels, H, W), jnp.float32)
    params2 = make_params(kp2, out_channels, mid_channels, out_channels, kernel_size)
    out2 = jax.block_until_ready(
        residual_feature_block(x2, params2, kernel_size,
                               compute_dtype=jnp.float32, row_tile=8))
    ref2 = residual_feature_block_ref(x2, params2, kernel_size)
    assert jnp.allclose(out2, ref2, atol=1e-4, rtol=1e-4), "no-proj mismatch vs reference"

    print("KERNEL_OK")
</pallas_src>

<mosaic_0001>
module attributes {stable_mosaic.version = 11 : i64} {
  func.func @_residual_block_kernel(%arg0: i32, %arg1: i32, %arg2: memref<1x1x4x384xf32, #tpu.memory_space<vmem>>, %arg3: memref<16x4xf32, #tpu.memory_space<vmem>>, %arg4: memref<16x1xf32, #tpu.memory_space<vmem>>, %arg5: memref<8x72xf32, #tpu.memory_space<vmem>>, %arg6: memref<8x1xf32, #tpu.memory_space<vmem>>, %arg7: memref<3x384xf32, #tpu.memory_space<vmem>>, %arg8: memref<1x1x384xf32, #tpu.memory_space<vmem>>, %arg9: memref<8x8xf32, #tpu.memory_space<vmem>>, %arg10: memref<8x1xf32, #tpu.memory_space<vmem>>, %arg11: memref<1x8x256xf32, #tpu.memory_space<vmem>>) attributes {dimension_semantics = [#tpu.dimension_semantics<parallel>, #tpu.dimension_semantics<parallel>], iteration_bounds = array<i64: 2, 1>, scalar_prefetch = 0 : i64, scratch_operands = 0 : i64, tpu.core_type = #tpu.core_type<tc>, window_params = [{transform_indices = @transform_0, window_bounds = array<i64: 1, 1, 4, 384>}, {pipeline_mode = #tpu.pipeline_mode<synchronous>, transform_indices = @transform_1, window_bounds = array<i64: 16, 4>}, {pipeline_mode = #tpu.pipeline_mode<synchronous>, transform_indices = @transform_2, window_bounds = array<i64: 16, 1>}, {pipeline_mode = #tpu.pipeline_mode<synchronous>, transform_indices = @transform_3, window_bounds = array<i64: 8, 72>}, {pipeline_mode = #tpu.pipeline_mode<synchronous>, transform_indices = @transform_4, window_bounds = array<i64: 8, 1>}, {pipeline_mode = #tpu.pipeline_mode<synchronous>, transform_indices = @transform_5, window_bounds = array<i64: 3, 384>}, {transform_indices = @transform_6, window_bounds = array<i64: 1, 1, 384>}, {pipeline_mode = #tpu.pipeline_mode<synchronous>, transform_indices = @transform_7, window_bounds = array<i64: 8, 8>}, {pipeline_mode = #tpu.pipeline_mode<synchronous>, transform_indices = @transform_8, window_bounds = array<i64: 8, 1>}, {transform_indices = @transform_9, window_bounds = array<i64: 1, 8, 256>}]} {
    %c0 = arith.constant 0 : index
    %c0_0 = arith.constant 0 : index
    %c0_1 = arith.constant 0 : index
    %c0_2 = arith.constant 0 : index
    %0 = vector.load %arg2[%c0, %c0_0, %c0_1, %c0_2] : memref<1x1x4x384xf32, #tpu.memory_space<vmem>>, vector<1x1x4x384xf32>
    %1 = vector.shape_cast %0 : vector<1x1x4x384xf32> to vector<4x384xf32>
    %c0_3 = arith.constant 0 : index
    %c0_4 = arith.constant 0 : index
    %2 = vector.load %arg3[%c0_3, %c0_4] : memref<16x4xf32, #tpu.memory_space<vmem>>, vector<16x4xf32>
    %cst = arith.constant dense<0.000000e+00> : vector<16x384xf32>
    %3 = tpu.matmul %2, %1, %cst {dimension_numbers = #tpu.dot_dimension_numbers<[1], [0], [0], [1], [0, 0, 1, 1], [], []>} : vector<16x4xf32>, vector<4x384xf32>, vector<16x384xf32> -> vector<16x384xf32>
    %c0_5 = arith.constant 0 : index
    %c0_6 = arith.constant 0 : index
    %4 = vector.load %arg4[%c0_5, %c0_6] : memref<16x1xf32, #tpu.memory_space<vmem>>, vector<16x1xf32>
    %5 = vector.broadcast %4 : vector<16x1xf32> to vector<16x384xf32>
    %6 = arith.addf %3, %5 : vector<16x384xf32>
    %7 = vector.extract_strided_slice %6 {offsets = [8, 0], sizes = [8, 384], strides = [1, 1]} : vector<16x384xf32> to vector<8x384xf32>
    %8 = vector.extract_strided_slice %6 {offsets = [0, 0], sizes = [8, 384], strides = [1, 1]} : vector<16x384xf32> to vector<8x384xf32>
    %c0_7 = arith.constant 0 : index
    %c0_8 = arith.constant 0 : index
    %c0_9 = arith.constant 0 : index
    %9 = vector.load %arg8[%c0_7, %c0_8, %c0_9] : memref<1x1x384xf32, #tpu.memory_space<vmem>>, vector<1x1x384xf32>
    %10 = vector.shape_cast %9 : vector<1x1x384xf32> to vector<1x384xf32>
    %11 = vector.broadcast %10 : vector<1x384xf32> to vector<8x384xf32>
    %12 = arith.mulf %8, %11 : vector<8x384xf32>
    %c0_10 = arith.constant 0 : index
    %c0_11 = arith.constant 0 : index
    %13 = vector.load %arg7[%c0_10, %c0_11] : memref<3x384xf32, #tpu.memory_space<vmem>>, vector<3x384xf32>
    %c17_i32 = arith.constant 17 : i32
    %14 = tpu.dynamic_rotate %12 by %c17_i32 dim 1 : vector<8x384xf32>, i32 -> vector<8x384xf32>
    %15 = vector.extract_strided_slice %13 {offsets = [0, 0], sizes = [1, 384], strides = [1, 1]} : vector<3x384xf32> to vector<1x384xf32>
    %16 = vector.broadcast %15 : vector<1x384xf32> to vector<8x384xf32>
    %17 = arith.mulf %14, %16 : vector<8x384xf32>
    %c16_i32 = arith.constant 16 : i32
    %18 = tpu.dynamic_rotate %12 by %c16_i32 dim 1 : vector<8x384xf32>, i32 -> vector<8x384xf32>
    %c15_i32 = arith.constant 15 : i32
    %19 = tpu.dynamic_rotate %12 by %c15_i32 dim 1 : vector<8x384xf32>, i32 -> vector<8x384xf32>
    %20 = vector.extract_strided_slice %13 {offsets = [2, 0], sizes = [1, 384], strides = [1, 1]} : vector<3x384xf32> to vector<1x384xf32>
    %21 = vector.broadcast %20 : vector<1x384xf32> to vector<8x384xf32>
    %22 = arith.mulf %19, %21 : vector<8x384xf32>
    %c1_i32 = arith.constant 1 : i32
    %23 = tpu.dynamic_rotate %12 by %c1_i32 dim 1 : vector<8x384xf32>, i32 -> vector<8x384xf32>
    %24 = vector.extract_strided_slice %13 {offsets = [0, 0], sizes = [1, 384], strides = [1, 1]} : vector<3x384xf32> to vector<1x384xf32>
    %25 = vector.broadcast %24 : vector<1x384xf32> to vector<8x384xf32>
    %26 = arith.mulf %23, %25 : vector<8x384xf32>
    %c383_i32 = arith.constant 383 : i32
    %27 = tpu.dynamic_rotate %12 by %c383_i32 dim 1 : vector<8x384xf32>, i32 -> vector<8x384xf32>
    %28 = vector.extract_strided_slice %13 {offsets = [2, 0], sizes = [1, 384], strides = [1, 1]} : vector<3x384xf32> to vector<1x384xf32>
    %29 = vector.broadcast %28 : vector<1x384xf32> to vector<8x384xf32>
    %30 = arith.mulf %27, %29 : vector<8x384xf32>
    %c369_i32 = arith.constant 369 : i32
    %31 = tpu.dynamic_rotate %12 by %c369_i32 dim 1 : vector<8x384xf32>, i32 -> vector<8x384xf32>
    %32 = vector.extract_strided_slice %13 {offsets = [0, 0], sizes = [1, 384], strides = [1, 1]} : vector<3x384xf32> to vector<1x384xf32>
    %33 = vector.broadcast %32 : vector<1x384xf32> to vector<8x384xf32>
    %34 = arith.mulf %31, %33 : vector<8x384xf32>
    %c368_i32 = arith.constant 368 : i32
    %35 = tpu.dynamic_rotate %12 by %c368_i32 dim 1 : vector<8x384xf32>, i32 -> vector<8x384xf32>
    %c367_i32 = arith.constant 367 : i32
    %36 = tpu.dynamic_rotate %12 by %c367_i32 dim 1 : vector<8x384xf32>, i32 -> vector<8x384xf32>
    %37 = vector.extract_strided_slice %13 {offsets = [2, 0], sizes = [1, 384], strides = [1, 1]} : vector<3x384xf32> to vector<1x384xf32>
    %38 = vector.broadcast %37 : vector<1x384xf32> to vector<8x384xf32>
    %39 = arith.mulf %36, %38 : vector<8x384xf32>
    %40 = tpu.concatenate %17, %18, %22, %26, %12, %30, %34, %35, %39 in 0 : vector<8x384xf32>, vector<8x384xf32>, vector<8x384xf32>, vector<8x384xf32>, vector<8x384xf32>, vector<8x384xf32>, vector<8x384xf32>, vector<8x384xf32>, vector<8x384xf32> -> vector<72x384xf32>
    %c0_12 = arith.constant 0 : index
    %c0_13 = arith.constant 0 : index
    %41 = vector.load %arg5[%c0_12, %c0_13] : memref<8x72xf32, #tpu.memory_space<vmem>>, vector<8x72xf32>
    %cst_14 = arith.constant dense<0.000000e+00> : vector<8x384xf32>
    %42 = tpu.matmul %41, %40, %cst_14 {dimension_numbers = #tpu.dot_dimension_numbers<[1], [0], [0], [1], [0, 0, 1, 1], [], []>} : vector<8x72xf32>, vector<72x384xf32>, vector<8x384xf32> -> vector<8x384xf32>
    %c0_15 = arith.constant 0 : index
    %c0_16 = arith.constant 0 : index
    %43 = vector.load %arg6[%c0_15, %c0_16] : memref<8x1xf32, #tpu.memory_space<vmem>>, vector<8x1xf32>
    %44 = vector.broadcast %43 : vector<8x1xf32> to vector<8x384xf32>
    %45 = arith.addf %42, %44 : vector<8x384xf32>
    %cst_17 = arith.constant 0.000000e+00 : f32
    %46 = vector.broadcast %cst_17 : f32 to vector<8x384xf32>
    %47 = arith.maximumf %45, %46 : vector<8x384xf32>
    %c0_18 = arith.constant 0 : index
    %c0_19 = arith.constant 0 : index
    %48 = vector.load %arg9[%c0_18, %c0_19] : memref<8x8xf32, #tpu.memory_space<vmem>>, vector<8x8xf32>
    %49 = vector.extract_strided_slice %47 {offsets = [0, 16], sizes = [8, 256], strides = [1, 1]} : vector<8x384xf32> to vector<8x256xf32>
    %cst_20 = arith.constant dense<0.000000e+00> : vector<8x256xf32>
    %50 = tpu.matmul %48, %49, %cst_20 {dimension_numbers = #tpu.dot_dimension_numbers<[1], [0], [0], [1], [0, 0, 1, 1], [], []>} : vector<8x8xf32>, vector<8x256xf32>, vector<8x256xf32> -> vector<8x256xf32>
    %c0_21 = arith.constant 0 : index
    %c0_22 = arith.constant 0 : index
    %51 = vector.load %arg10[%c0_21, %c0_22] : memref<8x1xf32, #tpu.memory_space<vmem>>, vector<8x1xf32>
    %52 = vector.broadcast %51 : vector<8x1xf32> to vector<8x256xf32>
    %53 = arith.addf %50, %52 : vector<8x256xf32>
    %54 = vector.extract_strided_slice %7 {offsets = [0, 16], sizes = [8, 256], strides = [1, 1]} : vector<8x384xf32> to vector<8x256xf32>
    %55 = arith.addf %54, %53 : vector<8x256xf32>
    %cst_23 = arith.constant 0.000000e+00 : f32
    %56 = vector.broadcast %cst_23 : f32 to vector<8x256xf32>
    %57 = arith.maximumf %55, %56 : vector<8x256xf32>
    %c0_24 = arith.constant 0 : index
    %c0_25 = arith.constant 0 : index
    %c0_26 = arith.constant 0 : index
    %58 = vector.load %arg11[%c0_24, %c0_25, %c0_26] : memref<1x8x256xf32, #tpu.memory_space<vmem>>, vector<1x8x256xf32>
    %59 = vector.shape_cast %58 : vector<1x8x256xf32> to vector<8x256xf32>
    %60 = vector.shape_cast %57 : vector<8x256xf32> to vector<1x8x256xf32>
    tpu.vector_store %arg11[%c0_24, %c0_25, %c0_26], %60 {strides = array<i32>} : memref<1x8x256xf32, #tpu.memory_space<vmem>>, vector<1x8x256xf32>,
    return
  }
  func.func @transform_0(%arg0: i32, %arg1: i32) -> (i32, i32, i32, i32) {
    %c0_i32 = arith.constant 0 : i32
    %c0_i32_0 = arith.constant 0 : i32
    %c0_i32_1 = arith.constant 0 : i32
    return %arg0, %arg1, %c0_i32, %c0_i32_0 : i32, i32, i32, i32
  }
  func.func @transform_1(%arg0: i32, %arg1: i32) -> (i32, i32) {
    %c0_i32 = arith.constant 0 : i32
    %c0_i32_0 = arith.constant 0 : i32
    %c0_i32_1 = arith.constant 0 : i32
    return %c0_i32, %c0_i32_0 : i32, i32
  }
  func.func @transform_2(%arg0: i32, %arg1: i32) -> (i32, i32) {
    %c0_i32 = arith.constant 0 : i32
    %c0_i32_0 = arith.constant 0 : i32
    %c0_i32_1 = arith.constant 0 : i32
    return %c0_i32, %c0_i32_0 : i32, i32
  }
  func.func @transform_3(%arg0: i32, %arg1: i32) -> (i32, i32) {
    %c0_i32 = arith.constant 0 : i32
    %c0_i32_0 = arith.constant 0 : i32
    %c0_i32_1 = arith.constant 0 : i32
    return %c0_i32, %c0_i32_0 : i32, i32
  }
  func.func @transform_4(%arg0: i32, %arg1: i32) -> (i32, i32) {
    %c0_i32 = arith.constant 0 : i32
    %c0_i32_0 = arith.constant 0 : i32
    %c0_i32_1 = arith.constant 0 : i32
    return %c0_i32, %c0_i32_0 : i32, i32
  }
  func.func @transform_5(%arg0: i32, %arg1: i32) -> (i32, i32) {
    %c0_i32 = arith.constant 0 : i32
    %c0_i32_0 = arith.constant 0 : i32
    %c0_i32_1 = arith.constant 0 : i32
    return %c0_i32, %c0_i32_0 : i32, i32
  }
  func.func @transform_6(%arg0: i32, %arg1: i32) -> (i32, i32, i32) {
    %c0_i32 = arith.constant 0 : i32
    %c0_i32_0 = arith.constant 0 : i32
    %c0_i32_1 = arith.constant 0 : i32
    return %arg1, %c0_i32, %c0_i32_0 : i32, i32, i32
  }
  func.func @transform_7(%arg0: i32, %arg1: i32) -> (i32, i32) {
    %c0_i32 = arith.constant 0 : i32
    %c0_i32_0 = arith.constant 0 : i32
    %c0_i32_1 = arith.constant 0 : i32
    return %c0_i32, %c0_i32_0 : i32, i32
  }
  func.func @transform_8(%arg0: i32, %arg1: i32) -> (i32, i32) {
    %c0_i32 = arith.constant 0 : i32
    %c0_i32_0 = arith.constant 0 : i32
    %c0_i32_1 = arith.constant 0 : i32
    return %c0_i32, %c0_i32_0 : i32, i32
  }
  func.func @transform_9(%arg0: i32, %arg1: i32) -> (i32, i32, i32) {
    %c0_i32 = arith.constant 0 : i32
    %c0_i32_0 = arith.constant 0 : i32
    return %arg0, %c0_i32, %arg1 : i32, i32, i32
  }
}

</mosaic_0001>

<bundles_post_ra>
// kernel: tpu_custom_call.1
= control target key start
LH: loop header
LB: loop body
LE: loop exit
PB: predicated region body
PF: predicated region fallthrough
CT: control target
= control target key end

     0   :  { %14 = vsyncpa [#allocation3], 0  ;;  %s1765_s0 = inlined_call_operand.vmem [shape: f32[2,1,4,384], index: 0, kind: input, shape index: {}]   ;;  %s1766_s1 = inlined_call_operand.vmem [shape: f32[16,4], index: 1, kind: input, shape index: {}]   ;;  %s1767_s2 = inlined_call_operand.vmem [shape: f32[16,1], index: 2, kind: input, shape index: {}]   ;;  %s1768_s3 = inlined_call_operand.vmem [shape: f32[8,72], index: 3, kind: input, shape index: {}]   ;;  %s1769_s4 = inlined_call_operand.vmem [shape: f32[8,1], index: 4, kind: input, shape index: {}]   ;;  %s1770_s5 = inlined_call_operand.vmem [shape: f32[3,384], index: 5, kind: input, shape index: {}]   ;;  %s1771_s6 = inlined_call_operand.vmem [shape: f32[1,1,384], index: 6, kind: input, shape index: {}]   ;;  %s1772_s7 = inlined_call_operand.vmem [shape: f32[8,8], index: 7, kind: input, shape index: {}]   ;;  %s1773_s8 = inlined_call_operand.vmem [shape: f32[8,1], index: 8, kind: input, shape index: {}]   ;;  %s1774_s9 = inlined_call_operand.hbm [shape: f32[2,8,256], index: 9, kind: output, shape index: {}]  }
   0x1   :  { %16 = vsyncpa [#allocation3 + $0x1], 0  ;;  %s1449_s30 = smov 0   ;;  %s1451_s10 = smov 0  }
   0x2   :  { %s1453_s11 = smov 0   ;;  %s1455_s12 = smov 0  }
   0x3   :  { %s1457_s13 = smov 0   ;;  %s1459_s14 = smov 0  }
   0x4 LB: > { %s1134_s15 = sadd.s32 4294967295, %s1384_s14   ;;  %s1135_s16 = sadd.s32 4294967294, %s1384_s14   ;;  %s1384_s14 = sphi %s1459_s14, %s22_s14   ;;  %s1380_s13 = sphi %s1457_s13, %s1781_s13   ;;  %s1376_s12 = sphi %s1455_s12, %s1780_s12   ;;  %s1372_s11 = sphi %s1453_s11, %s1779_s11   ;;  %s1368_s10 = sphi %s1451_s10, %s1778_s10   ;;  %s1364_s30 = sphi %s1449_s30, %s1777_s30  }
   0x5   : > { %s34_s17 = sadd.s32 1, %s1380_s13  ;;  %s244_s18 = sadd.s32 1, %s1372_s11 }
   0x6   : > { %p36_p0 = scmp.ge.s32.totalorder %s34_s17, 2  ;;  %p254_p1 = scmp.ne.s32.totalorder %s1372_s11, %s1368_s10 }
   0x7   : > { %p255_p2 = scmp.eq.s32.totalorder %s1134_s15, 1  ;;  %p260_p3 = scmp.ne.s32.totalorder %s1368_s10, %s1364_s30 }
   0x8   : > { %s1783_s17 = smov (%p36_p0, %s34_s17), 0  ;;  %p261_p5 = scmp.eq.s32.totalorder %s1135_s16, 1 }
   0x9   : > { %p1489_p4 = por %p255_p2, %p254_p1  ;;  %s239_s20 = ssub.s32 %s1380_s13, %s1783_s17 }
   0xa   : > { %p1139_p6 = scmp.ge.s32.totalorder %s1384_s14, 1  ;;  %p242_p7 = scmp.eq.s32.totalorder %s239_s20, 0 }
   0xb   : > { %p1496_p8 = por %p261_p5, %p260_p3  ;;  %p319_p9 = scmp.lt.s32.totalorder %s1384_s14, 3 }
   0xc   : > { %s1502_s22 = scalar_select %p242_p7, %s1372_s11, %s244_s18  }
   0xd   : > { %p320_p10 = pnand %p1139_p6, %p319_p9 }
   0xe   : > { %p363_p11 = scmp.lt.s32.totalorder (!%p320_p10), %s1376_s12, 1  ;;  %v379_v0 = vld [vmem:[%s1766_s1] sm:$0xff] (!%p320_p10)  ;;  %vm396_vm0 = vcmask (!%p320_p10), 31744   ;;  %v1386_v1 = vmov (!%p320_p10), 0.0   ;;  %v1387_v3 = vmov (!%p320_p10), 0   ;;  %vm403_vm1 = vcmask (!%p320_p10), 1043456  }
   0xf   : > { %323 = sbr.rel (%p320_p10) target bundleno = 1212 (0x4bc), region = 56  ;;  %1173 = vmatprep.mubr.msk.f32.mxu1 (!%p320_p10), %vm396_vm0, %v379_v0  ;;  %474 = vmatprep.mubr.f32.mxu0 (!%p320_p10), %v1386_v1  ;;  %v381_v2 = vld [vmem:[%s1767_s2] sm:$0xff] (!%p320_p10)  ;;  %v380_v6 = vld [vmem:[%s1766_s1 + $0x8] sm:$0xff] (!%p320_p10)  ;;  %v564_v8 = vlaneseq (!%p320_p10)  ;;  %s1388_s25 = smov (!%p320_p10), 15   ;;  %v1392_v27 = vmov (!%p320_p10), 0.0|0.0   ;;  %vm1395_vm2 = vmmov (!%p320_p10), 0  }
  0x10   : > { %1293 = vset.pattern.permute.xlu0 (!%p320_p10), %v1387_v3  ;;  %1304 = vset.pattern.permute.xlu1 (!%p320_p10), %v1387_v3  ;;  %v562_v11 = vld [vmem:[%s1771_s6] sm:$0x7] (!%p320_p10)  ;;  %s1389_s26 = smov (!%p320_p10), 17   ;;  %s1393_s29 = smov (!%p320_p10), 127   ;;  %v583_v43 = vld [vmem:[%s1770_s5 + $0x8] sm:$0x7] (!%p320_p10) }
  0x11   : > { %385 = vperm.xlu0 (!%p320_p10), %1293, %v381_v2   ;;  %v1526_v9 = vshrl.u32 (!%p320_p10), %v564_v8, 7  ;;  %s1394_s15 = smov (!%p320_p10), 113   ;;  %s1397_s18 = smov (!%p320_p10), 111   ;;  %v741_v33 = vld [vmem:[%s1769_s4] sm:$0xff] (!%p320_p10)  ;;  %v1590_v42 = vand.u32 (!%p320_p10), 127, %v564_v8  ;;  %vm747_vm11 = vcmask (!%p320_p10), 588800  }
  0x12   : > { %v582_v40 = vld [vmem:[%s1770_s5] sm:$0x77] (!%p320_p10)  ;;  %vm911_vm12 = vcmask (!%p320_p10), 916480   ;;  %vm916_vm13 = vcmask (!%p320_p10), 64512   ;;  %vm997_vm14 = vcmask (!%p320_p10), 130048  }
  0x13   : > { %v1529_v10 = vsub.s32 (!%p320_p10), 2, %v1526_v9  ;;  %v1538_v15 = vsub.s32 (!%p320_p10), 0, %v1526_v9  ;;  %v570_v24 = vsub.s32 (!%p320_p10), 1, %v1526_v9  ;;  %v604_v41 = vsub.s32 (!%p320_p10), 4, %v1526_v9 }
  0x14   : > { %v654_v46 = vsub.s32 (!%p320_p10), 6, %v1526_v9  ;;  %vm592_vm3 = vcmp.lt.s32.totalorder (!%p320_p10), %v1590_v42, 17  ;;  %vm684_vm4 = vcmp.lt.s32.totalorder (!%p320_p10), %v1590_v42, 1  ;;  %vm644_vm5 = vcmp.lt.s32.totalorder (!%p320_p10), %v1590_v42, 15 }
  0x15   : > { %v575_v14 = vrot.slane (!%p320_p10), %v562_v11, %v1529_v10  ;;  %v567_v22 = vrot.slane (!%p320_p10), %v562_v11, %v1538_v15  ;;  %v571_v26 = vrot.slane (!%p320_p10), %v562_v11, %v570_v24  ;;  %v601_v47 = vrot.slane (!%p320_p10), %v582_v40, %v1538_v15 }
  0x16   : > { %s364_s27 = scalar_select %p363_p11, %s1376_s12, 1  ;;  %v605_v48 = vrot.slane %v582_v40, %v604_v41  ;;  %v609_v49 = vrot.slane %v583_v43, %v1538_v15  ;;  %v651_v50 = vrot.slane %v582_v40, %v1529_v10  ;;  %v659_v52 = vrot.slane %v583_v43, %v1529_v10 }
  0x17   : > { %v655_v54 = vrot.slane %v582_v40, %v654_v46  ;;  %v1604_v55 = vrot.slane %v601_v47, %v1538_v15  ;;  %vm697_vm6 = vcmp.lt.s32.totalorder %v1590_v42, 127  ;;  %vm634_vm7 = vcmp.lt.s32.totalorder %v1590_v42, 16 }
  0x18   : > { %s1225_s28 = smul.u32 12, %s364_s27  ;;  %s1390_s27 = smov 16   ;;  %v1608_v57 = vrot.slane %v605_v48, %v1538_v15  ;;  %v1611_v58 = vrot.slane %v609_v49, %v1538_v15  ;;  %v1615_v59 = vrot.slane %v651_v50, %v1529_v10  ;;  %v1618_v62 = vrot.slane %v659_v52, %v1529_v10 }
  0x19   : > { %v1622_v63 = vrot.slane %v655_v54, %v1529_v10  ;;  %vm710_vm8 = vcmp.lt.s32.totalorder %v1590_v42, 113  ;;  %vm723_vm9 = vcmp.lt.s32.totalorder %v1590_v42, 112  ;;  %vm733_vm10 = vcmp.lt.s32.totalorder %v1590_v42, 111 }
  0x1a   : > { %s371_s16 = scalar_lea.vmem %s1765_s0, %s1225_s28  ;;  %s1391_s28 = smov 1  }
  0x1b   : > { %v378_v4 = vld [vmem:[%s371_s16 + $0x8] sm:$0xf]  ;;  %v377_v5 = vld [vmem:[%s371_s16] sm:$0xff]  ;;  %s1396_s16 = smov 112  }
  0x1c   : > { %1171 = vmatprep.subr.msk.mxu1 %vm403_vm1, %v378_v4  ;;  %v395_v7 = vcombine.high %v377_v5, %v377_v5 }
  0x1d   : > { %1172 = vmatpush3.msk.msra.mxu1 %vm403_vm1, %v378_v4 }
  0x1e   : > { %1142 = vmatprep.subr.msk.mxu0 %vm403_vm1, %v395_v7  ;;  %1174 = vmatmul.mubr.msk.f32.vlgmr.msra.gmra.mrb[0].mxu1 %vm396_vm0, %v380_v6 }
  0x1f   : > { %1143 = vmatpush1.msk.msra.mxu0 %vm403_vm1, %v377_v5  ;;  %1213 = vmatprep.subr.bf16.mxu1 %v1392_v27 }
  0x20   : > { %1144 = vmatmul.mubr.msk.f32.vlgmr.msra.gmra.mrb[0].mxu0 %vm396_vm0, %v379_v0  ;;  %1194 = vmatprep.mubr.msk.f32.mxu1 %vm1395_vm2, %v1386_v1 }
  0x21   : > { %480 = vmatprep.mubr.f32.mxu0 %v1386_v1 }
  0x24   : > { %1145 = vmatmul.mubr.msk.f32.gmra.mrb[2].mxu0 %vm396_vm0, %v380_v6 }
  0x25   : > { %815 = vmatprep.mubr.f32.mxu0 %v1386_v1 }
  0x90   : > { %v386_v12 = vpop.permute.xlu0 %385 }
  0xf1   : > { %v1534_v13 = vpop.f32.mrb[0].mxu1 }
  0xf2   : > { %v553_v16 = vpop.f32.mrb[1].mxu1 }
  0xf3   : > { %v554_v17 = vadd.f32 %v553_v16, %v386_v12  ;;  %v476_v18 = vpop.f32.mrb[0].mxu0 }
  0xf4   : > { %v478_v19 = vpop.f32.mrb[1].mxu0  ;;  %v477_v21 = vadd.f32 %v476_v18, %v386_v12 }
  0xf5   : > { %v1540_v20 = vmul.f32 %v575_v14, %v554_v17  ;;  %v479_v25 = vadd.f32 %v478_v19, %v386_v12 }
  0xf6   : > { %v1545_v23 = vmul.f32 %v567_v22, %v477_v21 }
  0xf7   : > { %642 = vrot.lane.b32.xlu0 %v1540_v20, %s1388_s25  ;;  %588 = vrot.lane.b32.xlu1 %v1540_v20, %s1389_s26  ;;  %v1556_v28 = vmul.f32 %v571_v26, %v479_v25  ;;  %v1573_v31 = vpop.f32.mrb[2].mxu0 }
  0xf8   : > { %v1575_v32 = vpop.f32.mrb[3].mxu0 }
  0xf9   : > { %v1294_v29 = vpack.i.bf16 %v1556_v28, %v1545_v23  ;;  %v1299_v30 = vpack.i.bf16 %v1540_v20, %v1556_v28 }
  0xfb   : > { %632 = vrot.lane.b32.xlu1 %v1540_v20, %s1390_s27  ;;  %584 = vrot.lane.b32.xlu0 %v1545_v23, %s1389_s26 }
  0xff   : > { %682 = vrot.lane.b32.xlu1 %v1540_v20, %s1391_s28  ;;  %638 = vrot.lane.b32.xlu0 %v1545_v23, %s1388_s25 }
 0x103   : > { %695 = vrot.lane.b32.xlu1 %v1540_v20, %s1393_s29  ;;  %678 = vrot.lane.b32.xlu0 %v1545_v23, %s1391_s28 }
 0x107   : > { %586 = vrot.lane.b32.xlu1 %v1556_v28, %s1389_s26  ;;  %691 = vrot.lane.b32.xlu0 %v1545_v23, %s1393_s29 }
 0x10b   : > { %640 = vrot.lane.b32.xlu1 %v1556_v28, %s1388_s25  ;;  %1295 = vrot.lane.b32.xlu0 %v1294_v29, %s1390_s27  ;;  %s1398_s25 = smov [#allocation2]  }
 0x10c   : > { %s1310_s26 = sshll.u32 %s1398_s25, 4  ;;  %s1311_s26 = int_to_ptr.vmem [resolvable:$false] %s1310_s26 }
 0x10f   : > { %680 = vrot.lane.b32.xlu1 %v1556_v28, %s1391_s28  ;;  %708 = vrot.lane.b32.xlu0 %v1540_v20, %s1394_s15 }
 0x113   : > { %704 = vrot.lane.b32.xlu1 %v1545_v23, %s1394_s15  ;;  %693 = vrot.lane.b32.xlu0 %v1556_v28, %s1393_s29  ;;  %s1157_s29 = sshll.u32 %s1376_s12, 8 }
 0x114   : > { %s1717_s24 = scalar_lea.hbm %s1774_s9, %s1157_s29 }
 0x117   : > { %706 = vrot.lane.b32.xlu1 %v1556_v28, %s1394_s15  ;;  %1300 = vrot.lane.b32.xlu0 %v1299_v30, %s1396_s16 }
 0x11b   : > { %717 = vrot.lane.b32.xlu1 %v1545_v23, %s1396_s16  ;;  %729 = vrot.lane.b32.xlu0 %v1556_v28, %s1397_s18 }
 0x11f   : > { %731 = vrot.lane.b32.xlu1 %v1540_v20, %s1397_s18  ;;  %727 = vrot.lane.b32.xlu0 %v1545_v23, %s1397_s18 }
 0x123   : > { %744 = vperm.xlu1 %1304, %v741_v33  }
 0x169   : > { %v643_v34 = vpop.permute.xlu0 %642  ;;  %v589_v35 = vpop.permute.xlu1 %588 }
 0x16d   : > { %v633_v36 = vpop.permute.xlu1 %632  ;;  %v585_v37 = vpop.permute.xlu0 %584 }
 0x16e   : > { %v595_v56 = vsel %vm592_vm3, %v589_v35, %v585_v37 }
 0x16f   : > { %v625_v3 = vmul.f32 %v1604_v55, %v595_v56 }
 0x171   : > { %v683_v38 = vpop.permute.xlu1 %682  ;;  %v639_v39 = vpop.permute.xlu0 %638 }
 0x172   : > { %v647_v7 = vsel %vm644_vm5, %v643_v34, %v639_v39 }
 0x175   : > { %v1595_v44 = vpop.permute.xlu1 %695  ;;  %v679_v45 = vpop.permute.xlu0 %678 }
 0x176   : > { %v687_v4 = vsel %vm684_vm4, %v683_v38, %v679_v45 }
 0x177   : > { %v688_v16 = vmul.f32 %v687_v4, %v1604_v55 }
 0x179   : > { %v587_v51 = vpop.permute.xlu1 %586  ;;  %v692_v53 = vpop.permute.xlu0 %691 }
 0x17a   : > { %v593_v60 = vsel %vm592_vm3, %v587_v51, %v589_v35  ;;  %v594_v61 = vsel %vm592_vm3, %v585_v37, %v587_v51  ;;  %v700_v24 = vsel %vm697_vm6, %v1595_v44, %v692_v53  ;;  %v675_v35 = vmul.f32 %v1615_v59, %v647_v7 }
 0x17b   : > { %v626_v8 = vmul.f32 %v1608_v57, %v594_v61  ;;  %v627_v9 = vmul.f32 %v1611_v58, %v593_v60 }
 0x17c   : > { %v1203_v41 = vpack.c.bf16 %v688_v16, %v675_v35 }
 0x17d   : > { %v641_v0 = vpop.permute.xlu1 %640  ;;  %v1296_v2 = vpop.permute.xlu0 %1295 }
 0x17e   : > { %v1298_v5 = vunpack.i.h.bf16 %v1296_v2  ;;  %v1297_v6 = vunpack.i.l.bf16 %v1296_v2  ;;  %v646_v10 = vsel %vm644_vm5, %v639_v39, %v641_v0  ;;  %v645_v11 = vsel %vm644_vm5, %v641_v0, %v643_v34 }
 0x17f   : > { %v676_v25 = vmul.f32 %v1622_v63, %v646_v10  ;;  %v677_v30 = vmul.f32 %v1618_v62, %v645_v11 }
 0x180   : > { %v635_v12 = vsel %vm634_vm7, %v1298_v5, %v633_v36  ;;  %v637_v14 = vsel %vm634_vm7, %v633_v36, %v1297_v6  ;;  %v636_v15 = vsel %vm634_vm7, %v1297_v6, %v1298_v5  ;;  %v703_v36 = vmul.f32 %v700_v24, %v1618_v62 }
 0x181   : > { %v1214_v17 = vpack.c.bf16 %v635_v12, %v627_v9  ;;  %v1199_v18 = vpack.c.bf16 %v637_v14, %v625_v3  ;;  %v681_v19 = vpop.permute.xlu1 %680  ;;  %v709_v21 = vpop.permute.xlu0 %708  ;;  %v1197_v22 = vpack.c.bf16 %v636_v15, %v626_v8  ;;  %v740_v12 = vld [vmem:[%s1768_s3] sm:$0xff] }
 0x182   : > { %v685_v26 = vsel %vm684_vm4, %v681_v19, %v683_v38  ;;  %v686_v29 = vsel %vm684_vm4, %v679_v45, %v681_v19  ;;  %v1220_v48 = vpack.c.bf16 %v703_v36, %v1540_v20 }
 0x183   : > { %v689_v33 = vmul.f32 %v686_v29, %v1608_v57  ;;  %v690_v34 = vmul.f32 %v685_v26, %v1611_v58  ;;  %1198 = vmatprep.subr.bf16.mxu0 %v1197_v22  ;;  %1215 = vmatpush3.bf16.msra.mxu1 %v1214_v17 }
 0x184   : > { %1200 = vmatpush1.bf16.msra.mxu0 %v1199_v18  ;;  %1216 = vmatprep.subr.bf16.mxu1 %v1392_v27 }
 0x185   : > { %v1217_v37 = vpack.c.bf16 %v690_v34, %v677_v30  ;;  %v705_v38 = vpop.permute.xlu1 %704  ;;  %v694_v39 = vpop.permute.xlu0 %693  ;;  %v1201_v40 = vpack.c.bf16 %v689_v33, %v676_v25  ;;  %v895_v30 = vld [vmem:[%s1772_s7] sm:$0xff] }
 0x186   : > { %v698_v43 = vsel %vm697_vm6, %v694_v39, %v1595_v44  ;;  %v699_v45 = vsel %vm697_vm6, %v692_v53, %v694_v39  ;;  %v713_v49 = vsel %vm710_vm8, %v709_v21, %v705_v38 }
 0x187   : > { %v701_v46 = vmul.f32 %v699_v45, %v1615_v59  ;;  %v702_v47 = vmul.f32 %v698_v43, %v1622_v63  ;;  %1202 = vmatprep.subr.bf16.mxu0 %v1201_v40  ;;  %1218 = vmatpush3.bf16.msra.mxu1 %v1217_v37 }
 0x188   : > { %1204 = vmatpush1.bf16.msra.mxu0 %v1203_v41  ;;  %1219 = vmatprep.subr.bf16.mxu1 %v1392_v27 }
 0x189   : > { %v1207_v44 = vpack.c.bf16 %v701_v46, %v1545_v23  ;;  %v707_v50 = vpop.permute.xlu1 %706  ;;  %v1301_v51 = vpop.permute.xlu0 %1300  ;;  %v1205_v52 = vpack.c.bf16 %v702_v47, %v1556_v28  ;;  %v716_v23 = vmul.f32 %v713_v49, %v1611_v58 }
 0x18a   : > { %v711_v53 = vsel %vm710_vm8, %v707_v50, %v709_v21  ;;  %v712_v54 = vsel %vm710_vm8, %v705_v38, %v707_v50  ;;  %v1303_v56 = vunpack.i.h.bf16 %v1301_v51  ;;  %v1302_v60 = vunpack.i.l.bf16 %v1301_v51  ;;  %v896_v21 = vld [vmem:[%s1773_s8] sm:$0xff] }
 0x18b   : > { %v715_v61 = vmul.f32 %v711_v53, %v1608_v57  ;;  %1206 = vmatprep.subr.bf16.mxu0 %v1205_v52  ;;  %1221 = vmatpush3.bf16.msra.mxu1 %v1220_v48  ;;  %v714_v28 = vmul.f32 %v712_v54, %v1604_v55 }
 0x18c   : > { %1208 = vmatpush1.bf16.msra.mxu0 %v1207_v44  ;;  %v724_v20 = vsel %vm723_vm9, %v1302_v60, %v1303_v56  ;;  %1222 = vmatprep.subr.bf16.mxu1 %v1392_v27 }
 0x18d   : > { %v718_v0 = vpop.permute.xlu1 %717  ;;  %v730_v2 = vpop.permute.xlu0 %729  ;;  %v1209_v3 = vpack.c.bf16 %v724_v20, %v715_v61 }
 0x18e   : > { %v725_v4 = vsel %vm723_vm9, %v718_v0, %v1302_v60  ;;  %v726_v57 = vsel %vm723_vm9, %v1303_v56, %v718_v0 }
 0x18f   : > { %v1211_v5 = vpack.c.bf16 %v725_v4, %v714_v28  ;;  %v1223_v6 = vpack.c.bf16 %v726_v57, %v716_v23  ;;  %1210 = vmatprep.subr.bf16.mxu0 %v1209_v3 }
 0x191   : > { %v732_v7 = vpop.permute.xlu1 %731  ;;  %v728_v27 = vpop.permute.xlu0 %727  ;;  %1212 = vmatpush1.bf16.msra.mxu0 %v1211_v5  ;;  %1224 = vmatpush3.bf16.msra.mxu1 %v1223_v6 }
 0x192   : > { %v734_v58 = vsel %vm733_vm10, %v730_v2, %v732_v7  ;;  %v735_v55 = vsel %vm733_vm10, %v728_v27, %v730_v2  ;;  %v736_v8 = vsel %vm733_vm10, %v732_v7, %v728_v27  ;;  %1192 = vmatprep.subr.mxu1 %v1386_v1 }
 0x193   : > { %v738_v9 = vmul.f32 %v734_v58, %v1622_v63  ;;  %v737_v10 = vmul.f32 %v735_v55, %v1615_v59  ;;  %v739_v11 = vmul.f32 %v736_v8, %v1618_v62 }
 0x195   : > { %767 = vmatprep.subr.mxu0 %v738_v9  ;;  %1193 = vmatpush3.msra.mxu1 %v739_v11 }
 0x196   : > { %768 = vmatpush1.msra.mxu0 %v737_v10  ;;  %1195 = vmatmul.mubr.msk.f32.vlgmr.msra.gmra.mrb[2].mxu1 %vm747_vm11, %v740_v12 }
 0x197   : > { %1149 = vmatmul.mubr.msk.f32.vlgmr.msra.gmra.mrb[4].mxu0 %vm747_vm11, %v740_v12 }
 0x198   : > { %984 = vmatprep.mubr.f32.mxu0 %v1386_v1  ;;  %v382_v1 = vld [vmem:[%s1767_s2 + $0x8] sm:$0xff] }
 0x1a2   : > { %v745_v42 = vpop.permute.xlu1 %744 }
 0x269   : > { %v888_v14 = vpop.f32.mrb[2].mxu1 }
 0x26a   : > { %v889_v15 = vadd.f32 %v888_v14, %v745_v42  ;;  %v817_v63 = vpop.f32.mrb[4].mxu0  ;;  %v1196_v16 = vpop.f32.mrb[3].mxu1 }
 0x26b   : > { %v819_v59 = vpop.f32.mrb[5].mxu0  ;;  %v818_v18 = vadd.f32 %v817_v63, %v745_v42 }
 0x26c   : > { %v894_v17 = vmax.f32 %v889_v15, 0.0  ;;  %v820_v62 = vadd.f32 %v819_v59, %v745_v42 }
 0x26d   : > { %v892_v22 = vmax.f32 %v818_v18, 0.0 }
 0x26e   : > { %v893_v19 = vmax.f32 %v820_v62, 0.0  ;;  %909 = vrot.lane.b32.xlu1 %v894_v17, %s1396_s16 }
 0x270   : > { %907 = vrot.lane.b32.xlu0 %v893_v19, %s1396_s16 }
 0x272   : > { %899 = vperm.xlu1 %1304, %v896_v21  }
 0x274   : > { %905 = vrot.lane.b32.xlu0 %v892_v22, %s1396_s16 }
 0x278   : > { %390 = vperm.xlu0 %1293, %v382_v1  }
 0x2e0   : > { %v910_v24 = vpop.permute.xlu1 %909 }
 0x2e2   : > { %v908_v25 = vpop.permute.xlu0 %907 }
 0x2e3   : > { %v913_v26 = vsel %vm911_vm12, %v908_v25, %v910_v24 }
 0x2e4   : > { %920 = vmatprep.subr.mxu0 %v913_v26 }
 0x2e6   : > { %v906_v29 = vpop.permute.xlu0 %905 }
 0x2e7   : > { %v912_v33 = vsel %vm911_vm12, %v906_v29, %v908_v25 }
 0x2e8   : > { %921 = vmatpush1.msra.mxu0 %v912_v33 }
 0x2e9   : > { %1151 = vmatmul.mubr.msk.f32.vlgmr.msra.gmra.mrb[6].mxu0 %vm916_vm13, %v895_v30 }
 0x2f1   : > { %v900_v34 = vpop.permute.xlu1 %899 }
 0x2f7   : > { %v391_v39 = vpop.permute.xlu0 %390 }
 0x2f8   : > { %v483_v40 = vadd.f32 %v1573_v31, %v391_v39  ;;  %v485_v43 = vadd.f32 %v1575_v32, %v391_v39  ;;  %v559_v45 = vadd.f32 %v1534_v13, %v391_v39 }
 0x3bc   : > { %v986_v35 = vpop.f32.mrb[6].mxu0 }
 0x3bd   : > { %v987_v36 = vadd.f32 %v986_v35, %v900_v34  ;;  %v988_v37 = vpop.f32.mrb[7].mxu0 }
 0x3be   : > { %v989_v38 = vadd.f32 %v988_v37, %v900_v34 }
 0x3bf   : > { %993 = vrot.lane.b32.xlu1 %v987_v36, %s1390_s27 }
 0x3c0   : > { %995 = vrot.lane.b32.xlu0 %v989_v38, %s1390_s27  ;;  %s360_s27 = sand.u32 1, %s1368_s10  }
 0x3c1   : > { %s1140_s28 = sshll.u32 %s360_s27, 4  ;;  %s1024_s12 = scalar_lea.sflag [#allocation3], %s360_s27 }
 0x3c2   : > { %s362_s15 = scalar_lea.vmem [#allocation2], %s1140_s28  ;;  %s1312_s28 = scalar_lea.vmem %s1311_s26, 512 }
 0x3c3   : > { %s1040_s18 = sshll.u32 %s362_s15, 4  ;;  %s1719_s18 = int_to_ptr.vmem [resolvable:$true] %s1040_s18 }
 0x3c4   : > { %p1313_p1 = scmp.lt.s32.totalorder %s1719_s18, %s1311_s26 }
 0x431   : > { %v994_v41 = vpop.permute.xlu1 %993 }
 0x432   : > { %v1002_v46 = vadd.f32 %v994_v41, %v483_v40  ;;  %v996_v47 = vpop.permute.xlu0 %995 }
 0x433   : > { %v998_v48 = vsel %vm997_vm14, %v994_v41, %v996_v47  ;;  %v1004_v50 = vadd.f32 %v996_v47, %v559_v45 }
 0x434   : > { %v1005_v49 = vmax.f32 %v1002_v46, 0.0  ;;  %v1003_v44 = vadd.f32 %v998_v48, %v485_v43 }
 0x435   : > { %v1007_v52 = vmax.f32 %v1004_v50, 0.0 }
 0x436   : > { %v1006_v51 = vmax.f32 %v1003_v44, 0.0  ;;  %1011 = vrot.lane.b32.xlu1 %v1005_v49, %s1396_s16 }
 0x438   : > { %1013 = vrot.lane.b32.xlu0 %v1006_v51, %s1396_s16 }
 0x43a   : > { %1015 = vrot.lane.b32.xlu1 %v1007_v52, %s1396_s16  ;;  %s1306_s16 = scalar_lea.vmem %s1719_s18, 256 }
 0x43b   : > { %p1307_p12 = scmp.ne.s32.totalorder %s1719_s18, %s1306_s16  ;;  %p1314_p2 = scmp.lt.s32.totalorder %s1312_s28, %s1306_s16 }
 0x43d   : > { %p1308_p13 = pnand %p1307_p12, %p1489_p4  ;;  %p1315_p3 = por %p1314_p2, %p1313_p1 }
 0x43f   : > { %p1309_p0 = pneg %p1308_p13 }
 0x441   : > { %p1316_p5 = pnand %p1315_p3, %p1309_p0 }
 0x4a8   : > { %v1012_v31 = vpop.permute.xlu1 %1011 }
 0x4aa   : > { %v1014_v13 = vpop.permute.xlu0 %1013 }
 0x4ab   : > { %v1017_v32 = vsel %vm911_vm12, %v1012_v31, %v1014_v13 }
 0x4ac   : > { %1021 = vst [vmem:[%s362_s15] sm:$0xff] %v1017_v32  ;;  %v1016_v53 = vpop.permute.xlu1 %1015 }
 0x4ad   : > { %v1018_v54 = vsel %vm911_vm12, %v1014_v13, %v1016_v53 }
 0x4ae   : > { %1022 = vst [vmem:[%s362_s15 + $0x8] sm:$0xff] %v1018_v54 }
 0x4af   : > { %1319 = shalt.err (!%p1316_p5)
}
 0x4b0   : > { %s1320_s27 = scalar_lea.hbm %s1717_s24, 256  ;;  %s1324_s20 = scalar_lea.hbm %s1774_s9, 512 }
 0x4b1   : > { %p1321_p6 = scmp.ne.s32.totalorder %s1717_s24, %s1320_s27  ;;  %p1325_p10 = scmp.lt.u32.totalorder %s1717_s24, %s1774_s9 }
 0x4b2   : > { %p1326_p11 = scmp.lt.u32.totalorder %s1324_s20, %s1320_s27  ;;  %p1328_p13 = scmp.lt.u32.totalorder %s1320_s27, %s1717_s24 }
 0x4b3   : > { %p1322_p7 = pnand %p1321_p6, %p1489_p4 }
 0x4b4   : > { %p1327_p12 = por %p1326_p11, %p1325_p10 }
 0x4b5   : > { %p1323_p9 = pneg %p1322_p7 }
 0x4b6   : > { %p1329_p0 = por %p1328_p13, %p1327_p12 }
 0x4b8   : > { %p1330_p1 = pnand %p1329_p0, %p1323_p9 }
 0x4ba   : > { %1333 = shalt.err (!%p1330_p1)
}
 0x4bb   : > { %1226 = dma.vmem_to_hbm [thread:$0]  (%p1489_p4), %s1719_s18, 256, %s1717_s24, %s1024_s12  }
 0x4bc PF: > { %p1232_p2 = scmp.ge.s32.totalorder %s1384_s14, 2  ;;  %s1052_s16 = sand.u32 1, %s1364_s30  }
 0x4bd   : > { %s1053_s26 = scalar_lea.sflag [#allocation3], %s1052_s16 }
 0x4be   : > { %p1229_p3 = pnand %p1232_p2, %p1496_p8 }
 0x4c0   : > { %1359 = dma.done.wait (!%p1229_p3), %s1053_s26, 256  }
 0x4c1   : > { %1361 = vsyncadd (!%p1229_p3), %s1053_s26, 4294967040  ;;  %s22_s14 = sadd.s32 1, %s1384_s14   ;;  %s1777_s30 = smov %s1368_s10 }
 0x4c2   : > { %p19_p5 = scmp.ge.s32.totalorder %s22_s14, 4   ;;  %s1778_s10 = smov %s1372_s11 }
 0x4c3   : > { %s1779_s11 = smov %s1502_s22  ;;  %s1780_s12 = smov %s1380_s13 }
 0x4c4   : > { %s1781_s13 = smov %s1783_s17  ;;  %21 = sbr.rel (!%p19_p5) target bundleno = 4 (0x4), region = 94 }
 0x4cb   :  { %1058 = vsyncpa [#allocation3], 1 }
 0x4cc   :  { %1060 = vsyncpa [#allocation3 + $0x1], 1 }

</bundles_post_ra>
